<compile_context>
chip_gen: v5e
topology: v5e:2x2
jax: 0.10.0
libtpu: 0.0.40
codegen_flags: <defaults>
</compile_context>

<pallas_src>
import math
import functools

import jax
import jax.numpy as jnp
from jax.experimental import pallas as pl
from jax.experimental.pallas import tpu as pltpu


# --------------------------------------------------------------------------
# Kernel
# --------------------------------------------------------------------------
def _adj_atten_kernel(*refs, mid_dim, has_mask, scale_output):
    if has_mask:
        (main_ref, other_ref, fix_ref,
         wq_ref, bq_ref, wk_ref, bk_ref, mask_ref, o_ref) = refs
    else:
        (main_ref, other_ref, fix_ref,
         wq_ref, bq_ref, wk_ref, bk_ref, o_ref) = refs
        mask_ref = None

    # Q projection for this slab of query rows: (TN, mid_p), f32 accumulation.
    q = jnp.dot(main_ref[...], wq_ref[...],
                preferred_element_type=jnp.float32) + bq_ref[...]
    # K projection: (M, mid_p).  Recomputed per tile (see header note).
    k = jnp.dot(other_ref[...], wk_ref[...],
                preferred_element_type=jnp.float32) + bk_ref[...]

    # Scaled attention logits: Q @ K^T / sqrt(mid)   -> (TN, M)
    attn = jax.lax.dot_general(q, k, (((1,), (1,)), ((), ())),
                               preferred_element_type=jnp.float32)
    attn = attn * jnp.float32(1.0 / math.sqrt(mid_dim))

    # masked_fill(mask, -(1 << 32))
    if has_mask:
        attn = jnp.where(mask_ref[...] != 0, jnp.float32(-(1 << 32)), attn)

    # Numerically stable softmax over the M axis; fold diag(fix) into the
    # probabilities:  Attn @ diag(fix) @ other == (Attn * fix_row) @ other.
    m = jnp.max(attn, axis=-1, keepdims=True)
    e = jnp.exp(attn - m)
    s = jnp.sum(e, axis=-1, keepdims=True)
    inv_s = pl.reciprocal(s, approx=True)

    if scale_output:
        # Apply 1/s on the (TN, Kdim_p) output slab (cheaper when M >= Kdim_p).
        p = e * fix_ref[...]
        o = jnp.dot(p.astype(other_ref.dtype), other_ref[...],
                    preferred_element_type=jnp.float32) * inv_s
    else:
        # Apply 1/s on the (TN, M) probabilities (cheaper when M < Kdim_p).
        p = (e * inv_s) * fix_ref[...]
        o = jnp.dot(p.astype(other_ref.dtype), other_ref[...],
                    preferred_element_type=jnp.float32)

    o_ref[...] = o.astype(o_ref.dtype)


# --------------------------------------------------------------------------
# Wrapper
# --------------------------------------------------------------------------
def _round_up(x, m):
    return ((x + m - 1) // m) * m


def _pad2(a, rows, cols):
    r, c = a.shape
    if r == rows and c == cols:
        return a
    return jnp.pad(a, ((0, rows - r), (0, cols - c)))


def _vmem_capacity_bytes():
    try:
        info = pltpu.get_tpu_info()
        for attr in ("vmem_capacity_bytes", "vmem_size_bytes", "vmem_bytes"):
            v = getattr(info, attr, None)
            if v:
                return int(v)
    except Exception:
        pass
    return 64 * 2**20  # conservative default (v7x per-TC VMEM)


def _choose_tile_n(N, M, qdim_p, kdim_p, itemsize):
    """Largest N-tile that fits comfortably in this chip generation's VMEM."""
    vmem = _vmem_capacity_bytes()
    budget = min(vmem, 128 * 2**20) // 4   # headroom: double buffers, weights, scratch
    per_row = (4 * M                       # f32 logits / softmax temporaries
               + 2 * itemsize * qdim_p     # main_feat slab (double buffered)
               + 2 * 1 * M                 # int8 mask slab (double buffered)
               + 2 * itemsize * kdim_p)    # output slab (double buffered)
    tn = budget // max(per_row, 1)
    return int(max(32, min(1024, tn)))


def adj_atten_agger(main_feat, other_feat, fix_feat, wq, bq, wk, bk,
                    mask=None, *, tile_n=None):
    """Pallas implementation of AdjAttenAgger.forward."""
    N, Qdim = main_feat.shape
    M, Kdim = other_feat.shape
    mid_dim = wq.shape[1]

    # Lane-dense padded feature dims (multiples of 128) -> unmasked MXU lanes
    # and unmasked vector stores for the output.
    qdim_p = _round_up(Qdim, 128)
    kdim_p = _round_up(Kdim, 128)
    mid_p = _round_up(mid_dim, 128)

    # Keep the caller's dtype for the large operands (bf16 halves HBM traffic);
    # dots accumulate in f32 regardless.
    in_dtype = main_feat.dtype
    itemsize = jnp.dtype(in_dtype).itemsize

    # N tiling: multiple of 32 (int8 mask sublane packing), capped by VMEM budget.
    if tile_n is None:
        tile_n = _choose_tile_n(N, M, qdim_p, kdim_p, itemsize)
    tile_n = max(32, _round_up(int(tile_n), 32))
    tile_n = min(tile_n, _round_up(N, 32))
    n_pad = _round_up(N, tile_n)
    grid_n = n_pad // tile_n

    # Pad / cast operands.
    main_p = _pad2(main_feat, n_pad, qdim_p)
    other_p = _pad2(other_feat.astype(in_dtype), M, kdim_p)
    wq_p = _pad2(wq.astype(in_dtype), qdim_p, mid_p)
    wk_p = _pad2(wk.astype(in_dtype), kdim_p, mid_p)
    bq_p = _pad2(bq.reshape(1, mid_dim).astype(jnp.float32), 1, mid_p)
    bk_p = _pad2(bk.reshape(1, mid_dim).astype(jnp.float32), 1, mid_p)
    fix_row = fix_feat.reshape(1, M).astype(jnp.float32)  # lane-dense row

    def row_spec(cols):      # tiled over N
        return pl.BlockSpec((tile_n, cols), lambda i: (i, 0))

    def whole_spec(shape):   # resident across all N tiles (same block index)
        return pl.BlockSpec(shape, lambda i: (0,) * len(shape))

    in_specs = [
        row_spec(qdim_p),               # main_feat slab
        whole_spec((M, kdim_p)),        # other_feat
        whole_spec((1, M)),             # fix row
        whole_spec((qdim_p, mid_p)),    # Wq
        whole_spec((1, mid_p)),         # bq
        whole_spec((kdim_p, mid_p)),    # Wk
        whole_spec((1, mid_p)),         # bk
    ]
    inputs = [main_p, other_p, fix_row, wq_p, bq_p, wk_p, bk_p]

    has_mask = mask is not None
    if has_mask:
        mask_i8 = _pad2(mask.astype(jnp.int8), n_pad, M)   # 4x smaller than f32
        in_specs.append(row_spec(M))
        inputs.append(mask_i8)
    # (mask is None  ->  no (N, M) mask stream is built, DMA'd or selected at all)

    # Apply the softmax denominator on the cheaper side (static choice).
    scale_output = M >= kdim_p

    flops = 2 * (n_pad * qdim_p * mid_p          # Q projection
                 + grid_n * M * kdim_p * mid_p   # K projection (per tile)
                 + n_pad * M * mid_p             # Q K^T
                 + n_pad * M * kdim_p)           # Attn @ V
    bytes_accessed = (sum(int(a.size) * a.dtype.itemsize for a in inputs)
                      + n_pad * kdim_p * itemsize)
    cost = pl.CostEstimate(flops=int(flops),
                           transcendentals=int(n_pad * M),
                           bytes_accessed=int(bytes_accessed))

    vmem_limit = int(min(_vmem_capacity_bytes(), 128 * 2**20) * 3 // 4)

    out = pl.pallas_call(
        functools.partial(_adj_atten_kernel, mid_dim=mid_dim,
                          has_mask=has_mask, scale_output=scale_output),
        out_shape=jax.ShapeDtypeStruct((n_pad, kdim_p), in_dtype),
        grid_spec=pltpu.PrefetchScalarGridSpec(
            num_scalar_prefetch=0,
            grid=(grid_n,),
            in_specs=in_specs,
            out_specs=pl.BlockSpec((tile_n, kdim_p), lambda i: (i, 0)),
        ),
        compiler_params=pltpu.CompilerParams(
            dimension_semantics=("parallel",),   # independent query-row tiles
            vmem_limit_bytes=vmem_limit),
        cost_estimate=cost,
    )(*inputs)

    return out[:N, :Kdim]


# --------------------------------------------------------------------------
# Pure-JAX reference (mirrors the PyTorch forward)
# --------------------------------------------------------------------------
def adj_atten_agger_ref(main_feat, other_feat, fix_feat, wq, bq, wk, bk, mask=None):
    mid_dim = wq.shape[1]
    Q = main_feat @ wq + bq
    K = other_feat @ wk + bk
    attn = (Q @ K.T) / math.sqrt(mid_dim)
    if mask is not None:
        attn = jnp.where(mask, jnp.float32(-(1 << 32)), attn)
    attn = jax.nn.softmax(attn, axis=-1)
    scaled_other = fix_feat[:, None] * other_feat
    return attn @ scaled_other


if __name__ == "__main__":
    key = jax.random.PRNGKey(0)
    # Small shapes; feature dims intentionally NOT multiples of 128 to exercise
    # the lane-dense padding path, and N chosen to exercise a multi-tile grid.
    N, M = 80, 24
    Qdim, Kdim, mid_dim = 20, 28, 32

    keys = jax.random.split(key, 8)
    main_feat = jax.random.normal(keys[0], (N, Qdim), jnp.float32)
    other_feat = jax.random.normal(keys[1], (M, Kdim), jnp.float32)
    fix_feat = jax.random.uniform(keys[2], (M,), jnp.float32)
    mask = jax.random.bernoulli(keys[3], 0.2, (N, M))

    # PyTorch-style Linear init (uniform(-1/sqrt(in), 1/sqrt(in)))
    bq_bound = 1.0 / math.sqrt(Qdim)
    bk_bound = 1.0 / math.sqrt(Kdim)
    wq = jax.random.uniform(keys[4], (Qdim, mid_dim), jnp.float32, -bq_bound, bq_bound)
    bq = jax.random.uniform(keys[5], (mid_dim,), jnp.float32, -bq_bound, bq_bound)
    wk = jax.random.uniform(keys[6], (Kdim, mid_dim), jnp.float32, -bk_bound, bk_bound)
    bk = jax.random.uniform(keys[7], (mid_dim,), jnp.float32, -bk_bound, bk_bound)

    # Masked path; tile_n=32 forces grid=(3,) incl. a padded partial tile.
    out_m = adj_atten_agger(main_feat, other_feat, fix_feat, wq, bq, wk, bk,
                            mask=mask, tile_n=32)
    out_m = jax.block_until_ready(out_m)
    ref_m = adj_atten_agger_ref(main_feat, other_feat, fix_feat, wq, bq, wk, bk,
                                mask=mask)
    assert out_m.shape == (N, Kdim)
    assert jnp.allclose(out_m, ref_m, atol=2e-3, rtol=2e-3), "masked mismatch"

    # Maskless path: the static maskless kernel variant (no (N, M) mask stream).
    out_u = adj_atten_agger(main_feat, other_feat, fix_feat, wq, bq, wk, bk)
    out_u = jax.block_until_ready(out_u)
    ref_u = adj_atten_agger_ref(main_feat, other_feat, fix_feat, wq, bq, wk, bk)
    assert out_u.shape == (N, Kdim)
    assert jnp.allclose(out_u, ref_u, atol=2e-3, rtol=2e-3), "maskless mismatch"

    print("KERNEL_OK")
</pallas_src>

<mosaic_0001>
module attributes {stable_mosaic.version = 11 : i64} {
  func.func @_adj_atten_kernel(%arg0: i32, %arg1: memref<32x128xf32, #tpu.memory_space<vmem>>, %arg2: memref<24x128xf32, #tpu.memory_space<vmem>>, %arg3: memref<1x24xf32, #tpu.memory_space<vmem>>, %arg4: memref<128x128xf32, #tpu.memory_space<vmem>>, %arg5: memref<1x128xf32, #tpu.memory_space<vmem>>, %arg6: memref<128x128xf32, #tpu.memory_space<vmem>>, %arg7: memref<1x128xf32, #tpu.memory_space<vmem>>, %arg8: memref<32x24xi8, #tpu.memory_space<vmem>>, %arg9: memref<32x128xf32, #tpu.memory_space<vmem>>) attributes {dimension_semantics = [#tpu.dimension_semantics<parallel>], iteration_bounds = array<i64: 3>, scalar_prefetch = 0 : i64, scratch_operands = 0 : i64, tpu.core_type = #tpu.core_type<tc>, window_params = [{transform_indices = @transform_0, window_bounds = array<i64: 32, 128>}, {pipeline_mode = #tpu.pipeline_mode<synchronous>, transform_indices = @transform_1, window_bounds = array<i64: 24, 128>}, {pipeline_mode = #tpu.pipeline_mode<synchronous>, transform_indices = @transform_2, window_bounds = array<i64: 1, 24>}, {pipeline_mode = #tpu.pipeline_mode<synchronous>, transform_indices = @transform_3, window_bounds = array<i64: 128, 128>}, {pipeline_mode = #tpu.pipeline_mode<synchronous>, transform_indices = @transform_4, window_bounds = array<i64: 1, 128>}, {pipeline_mode = #tpu.pipeline_mode<synchronous>, transform_indices = @transform_5, window_bounds = array<i64: 128, 128>}, {pipeline_mode = #tpu.pipeline_mode<synchronous>, transform_indices = @transform_6, window_bounds = array<i64: 1, 128>}, {transform_indices = @transform_7, window_bounds = array<i64: 32, 24>}, {transform_indices = @transform_8, window_bounds = array<i64: 32, 128>}]} {
    %c0 = arith.constant 0 : index
    %c0_0 = arith.constant 0 : index
    %0 = vector.load %arg1[%c0, %c0_0] : memref<32x128xf32, #tpu.memory_space<vmem>>, vector<32x128xf32>
    %c0_1 = arith.constant 0 : index
    %c0_2 = arith.constant 0 : index
    %1 = vector.load %arg4[%c0_1, %c0_2] : memref<128x128xf32, #tpu.memory_space<vmem>>, vector<128x128xf32>
    %cst = arith.constant dense<0.000000e+00> : vector<32x128xf32>
    %2 = tpu.matmul %0, %1, %cst {dimension_numbers = #tpu.dot_dimension_numbers<[1], [0], [0], [1], [0, 0, 1, 1], [], []>} : vector<32x128xf32>, vector<128x128xf32>, vector<32x128xf32> -> vector<32x128xf32>
    %c0_3 = arith.constant 0 : index
    %c0_4 = arith.constant 0 : index
    %3 = vector.load %arg5[%c0_3, %c0_4] : memref<1x128xf32, #tpu.memory_space<vmem>>, vector<1x128xf32>
    %4 = vector.broadcast %3 : vector<1x128xf32> to vector<32x128xf32>
    %5 = arith.addf %2, %4 : vector<32x128xf32>
    %c0_5 = arith.constant 0 : index
    %c0_6 = arith.constant 0 : index
    %6 = vector.load %arg2[%c0_5, %c0_6] : memref<24x128xf32, #tpu.memory_space<vmem>>, vector<24x128xf32>
    %c0_7 = arith.constant 0 : index
    %c0_8 = arith.constant 0 : index
    %7 = vector.load %arg6[%c0_7, %c0_8] : memref<128x128xf32, #tpu.memory_space<vmem>>, vector<128x128xf32>
    %cst_9 = arith.constant dense<0.000000e+00> : vector<24x128xf32>
    %8 = tpu.matmul %6, %7, %cst_9 {dimension_numbers = #tpu.dot_dimension_numbers<[1], [0], [0], [1], [0, 0, 1, 1], [], []>} : vector<24x128xf32>, vector<128x128xf32>, vector<24x128xf32> -> vector<24x128xf32>
    %c0_10 = arith.constant 0 : index
    %c0_11 = arith.constant 0 : index
    %9 = vector.load %arg7[%c0_10, %c0_11] : memref<1x128xf32, #tpu.memory_space<vmem>>, vector<1x128xf32>
    %10 = vector.broadcast %9 : vector<1x128xf32> to vector<24x128xf32>
    %11 = arith.addf %8, %10 : vector<24x128xf32>
    %cst_12 = arith.constant dense<0.000000e+00> : vector<32x24xf32>
    %12 = tpu.matmul %5, %11, %cst_12 {dimension_numbers = #tpu.dot_dimension_numbers<[1], [1], [0], [0], [0, 0, 1, 0], [], []>} : vector<32x128xf32>, vector<24x128xf32>, vector<32x24xf32> -> vector<32x24xf32>
    %cst_13 = arith.constant 0.176776692 : f32
    %13 = vector.broadcast %cst_13 : f32 to vector<32x24xf32>
    %14 = arith.mulf %12, %13 : vector<32x24xf32>
    %c0_14 = arith.constant 0 : index
    %c0_15 = arith.constant 0 : index
    %15 = vector.load %arg8[%c0_14, %c0_15] : memref<32x24xi8, #tpu.memory_space<vmem>>, vector<32x24xi8>
    %c0_i8 = arith.constant 0 : i8
    %16 = vector.broadcast %c0_i8 : i8 to vector<32x24xi8>
    %17 = arith.cmpi ne, %15, %16 : vector<32x24xi8>
    %cst_16 = arith.constant -4.2949673E+9 : f32
    %18 = vector.broadcast %cst_16 : f32 to vector<32x24xf32>
    %19 = arith.select %17, %18, %14 : vector<32x24xi1>, vector<32x24xf32>
    %cst_17 = arith.constant dense<0xFF800000> : vector<32xf32>
    %20 = vector.multi_reduction <maximumf>, %19, %cst_17 [1] : vector<32x24xf32> to vector<32xf32>
    %21 = vector.shape_cast %20 : vector<32xf32> to vector<32x1xf32>
    %22 = vector.broadcast %21 : vector<32x1xf32> to vector<32x24xf32>
    %23 = arith.subf %19, %22 : vector<32x24xf32>
    %24 = math.exp %23 : vector<32x24xf32>
    %cst_18 = arith.constant dense<0.000000e+00> : vector<32xf32>
    %25 = vector.multi_reduction <add>, %24, %cst_18 [1] : vector<32x24xf32> to vector<32xf32>
    %26 = vector.shape_cast %25 : vector<32xf32> to vector<32x1xf32>
    %27 = tpu.reciprocal %26 {approx = true} : vector<32x1xf32> -> vector<32x1xf32>
    %28 = vector.broadcast %27 : vector<32x1xf32> to vector<32x24xf32>
    %29 = arith.mulf %24, %28 : vector<32x24xf32>
    %c0_19 = arith.constant 0 : index
    %c0_20 = arith.constant 0 : index
    %30 = vector.load %arg3[%c0_19, %c0_20] : memref<1x24xf32, #tpu.memory_space<vmem>>, vector<1x24xf32>
    %31 = vector.broadcast %30 : vector<1x24xf32> to vector<32x24xf32>
    %32 = arith.mulf %29, %31 : vector<32x24xf32>
    %c0_21 = arith.constant 0 : index
    %c0_22 = arith.constant 0 : index
    %33 = vector.load %arg2[%c0_21, %c0_22] : memref<24x128xf32, #tpu.memory_space<vmem>>, vector<24x128xf32>
    %cst_23 = arith.constant dense<0.000000e+00> : vector<32x128xf32>
    %34 = tpu.matmul %32, %33, %cst_23 {dimension_numbers = #tpu.dot_dimension_numbers<[1], [0], [0], [1], [0, 0, 1, 1], [], []>} : vector<32x24xf32>, vector<24x128xf32>, vector<32x128xf32> -> vector<32x128xf32>
    %c0_24 = arith.constant 0 : index
    %c0_25 = arith.constant 0 : index
    %35 = vector.load %arg9[%c0_24, %c0_25] : memref<32x128xf32, #tpu.memory_space<vmem>>, vector<32x128xf32>
    tpu.vector_store %arg9[%c0_24, %c0_25], %34 {strides = array<i32>} : memref<32x128xf32, #tpu.memory_space<vmem>>, vector<32x128xf32>,
    return
  }
  func.func @transform_0(%arg0: i32) -> (i32, i32) {
    %c0_i32 = arith.constant 0 : i32
    %c0_i32_0 = arith.constant 0 : i32
    return %arg0, %c0_i32 : i32, i32
  }
  func.func @transform_1(%arg0: i32) -> (i32, i32) {
    %c0_i32 = arith.constant 0 : i32
    %c0_i32_0 = arith.constant 0 : i32
    %c0_i32_1 = arith.constant 0 : i32
    return %c0_i32, %c0_i32_0 : i32, i32
  }
  func.func @transform_2(%arg0: i32) -> (i32, i32) {
    %c0_i32 = arith.constant 0 : i32
    %c0_i32_0 = arith.constant 0 : i32
    %c0_i32_1 = arith.constant 0 : i32
    return %c0_i32, %c0_i32_0 : i32, i32
  }
  func.func @transform_3(%arg0: i32) -> (i32, i32) {
    %c0_i32 = arith.constant 0 : i32
    %c0_i32_0 = arith.constant 0 : i32
    %c0_i32_1 = arith.constant 0 : i32
    return %c0_i32, %c0_i32_0 : i32, i32
  }
  func.func @transform_4(%arg0: i32) -> (i32, i32) {
    %c0_i32 = arith.constant 0 : i32
    %c0_i32_0 = arith.constant 0 : i32
    %c0_i32_1 = arith.constant 0 : i32
    return %c0_i32, %c0_i32_0 : i32, i32
  }
  func.func @transform_5(%arg0: i32) -> (i32, i32) {
    %c0_i32 = arith.constant 0 : i32
    %c0_i32_0 = arith.constant 0 : i32
    %c0_i32_1 = arith.constant 0 : i32
    return %c0_i32, %c0_i32_0 : i32, i32
  }
  func.func @transform_6(%arg0: i32) -> (i32, i32) {
    %c0_i32 = arith.constant 0 : i32
    %c0_i32_0 = arith.constant 0 : i32
    %c0_i32_1 = arith.constant 0 : i32
    return %c0_i32, %c0_i32_0 : i32, i32
  }
  func.func @transform_7(%arg0: i32) -> (i32, i32) {
    %c0_i32 = arith.constant 0 : i32
    %c0_i32_0 = arith.constant 0 : i32
    return %arg0, %c0_i32 : i32, i32
  }
  func.func @transform_8(%arg0: i32) -> (i32, i32) {
    %c0_i32 = arith.constant 0 : i32
    %c0_i32_0 = arith.constant 0 : i32
    return %arg0, %c0_i32 : i32, i32
  }
}

</mosaic_0001>

<bundles_post_ra>
// kernel: tpu_custom_call.1
= control target key start
LH: loop header
LB: loop body
LE: loop exit
PB: predicated region body
PF: predicated region fallthrough
CT: control target
= control target key end

     0   :  { %s1291_s0 = inlined_call_operand.hbm [shape: f32[96,128], index: 0, kind: input, shape index: {}]   ;;  %s1292_s1 = inlined_call_operand.vmem [shape: f32[24,128], index: 1, kind: input, shape index: {}]   ;;  %s1293_s2 = inlined_call_operand.vmem [shape: f32[1,24], index: 2, kind: input, shape index: {}]   ;;  %s1294_s3 = inlined_call_operand.hbm [shape: f32[128,128], index: 3, kind: input, shape index: {}]   ;;  %s1295_s4 = inlined_call_operand.vmem [shape: f32[1,128], index: 4, kind: input, shape index: {}]   ;;  %s1296_s5 = inlined_call_operand.hbm [shape: f32[128,128], index: 5, kind: input, shape index: {}]   ;;  %s1297_s6 = inlined_call_operand.vmem [shape: f32[1,128], index: 6, kind: input, shape index: {}]   ;;  %s1298_s7 = inlined_call_operand.vmem [shape: s8[96,24], index: 7, kind: input, shape index: {}]   ;;  %s1299_s8 = inlined_call_operand.hbm [shape: f32[96,128], index: 8, kind: output, shape index: {}]  }
   0x1   :  { %1302 = sst [smem:[#allocation12_spill]] %s1294_s3 }
   0x2   :  { %1303 = sst [smem:[#allocation13_spill]] %s1296_s5 }
   0x3   :  { %13 = vsyncpa [#allocation3], 0 }
   0x4   :  { %15 = vsyncpa [#allocation3 + $0x1], 0 }
   0x5   :  { %16 = vsyncpa [#allocation6], 0 }
   0x6   :  { %17 = vsyncpa [#allocation4], 0 }
   0x7   :  { %19 = vsyncpa [#allocation4 + $0x1], 0  ;;  %s1098_s27 = smov 0   ;;  %s1100_s28 = smov 0  }
   0x8   :  { %s1102_s29 = smov 0   ;;  %s1104_s30 = smov 0  }
   0x9 LB: > { %s1119_s9 = sadd.s32 4294967295, %s1044_s30   ;;  %s768_s10 = sadd.s32 4294967294, %s1044_s30   ;;  %s1044_s30 = sphi %s1104_s30, %s1316_s30   ;;  %s1040_s29 = sphi %s1102_s29, %s1315_s29   ;;  %s1036_s28 = sphi %s1100_s28, %s1314_s28   ;;  %s1032_s27 = sphi %s1098_s27, %s1313_s27  }
   0xa   : > { %p45_p0 = scmp.ne.s32.totalorder %s1036_s28, %s1032_s27  ;;  %p46_p1 = scmp.eq.s32.totalorder %s1119_s9, 0 }
   0xb   : > { %p221_p2 = scmp.eq.s32.totalorder %s1119_s9, 2  ;;  %p227_p3 = scmp.eq.s32.totalorder %s768_s10, 2 }
   0xc   : > { %p1128_p4 = por %p46_p1, %p45_p0  ;;  %p769_p5 = scmp.ge.s32.totalorder %s1044_s30, 1 }
   0xd   : > { %p1133_p6 = por %p227_p3, %p45_p0  ;;  %p234_p7 = scmp.lt.s32.totalorder %s1044_s30, 4 }
   0xe   : > { %s1306_s3 = sld [smem:[#allocation12_spill]]  ;;  %s1046_s17 = smov [#allocation5]  }
   0xf   : > { %p1141_p8 = pnand %p769_p5, %p234_p7  ;;  %s253_s18 = sshll.u32 %s1046_s17, 4  ;;  %s254_s18 = int_to_ptr.vmem [resolvable:$true] %s253_s18 }
  0x10   : > { %s1308_s5 = sld [smem:[#allocation13_spill]]  ;;  %s1300_s22 = smov 128  }
  0x11   : > { %p805_p9 = pneg %p1141_p8  ;;  %s1301_s23 = smov 8  }
  0x12   : > { %s1049_s24 = smov [#allocation7]   ;;  %s1159_s26 = sadd.s32 1, %s1044_s30  }
  0x13   : > { %p806_p10 = pnand %p805_p9, %p46_p1  ;;  %s270_s25 = sshll.u32 %s1049_s24, 4  ;;  %s271_s25 = int_to_ptr.vmem [resolvable:$true] %s270_s25 }
  0x14   : > { %s251_s15 = sshll.u32 %s1306_s3, 4  ;;  %s32_s10 = sadd.s32 1, %s1040_s29  ;;  %s252_s15 = int_to_ptr.hbm [resolvable:$true] %s251_s15 }
  0x15   : > { %808 = dma.hbm_to_vmem [thread:$0]  (!%p806_p10), %s252_s15, 2048, %s254_s18, [#allocation6], %s1300_s22, %s1300_s22, %s1301_s23  }
  0x16   : > { %s268_s21 = sshll.u32 %s1308_s5, 4  ;;  %s29_s13 = ssub.s32 %s1044_s30, %s1159_s26  ;;  %s269_s21 = int_to_ptr.hbm [resolvable:$true] %s268_s21 }
  0x17   : > { %811 = dma.hbm_to_vmem [thread:$0]  (!%p806_p10), %s269_s21, 2048, %s271_s25, [#allocation6], %s1300_s22, %s1300_s22, %s1301_s23  }
  0x18   : > { %p39_p11 = scmp.ne.s32.totalorder %s1040_s29, %s1036_s28  ;;  %p30_p12 = scmp.eq.s32.totalorder %s29_s13, 0 }
  0x19   : > { %p40_p13 = scmp.eq.s32.totalorder %s1044_s30, 0  ;;  %p822_p3 = scmp.lt.s32.totalorder %s1044_s30, 3 }
  0x1a   : > { %p1169_p0 = por %p221_p2, %p39_p11  ;;  %s287_s17 = sand.u32 1, %s1040_s29  }
  0x1b   : > { %s1175_s15 = scalar_select %p30_p12, %s1040_s29, %s32_s10  }
  0x1c   : > { %p41_p5 = por %p40_p13, %p39_p11  ;;  %s773_s18 = sshll.u32 %s287_s17, 5 }
  0x1d   : > { %s791_s19 = sshll.u32 %s1044_s30, 5  ;;  %s291_s25 = scalar_lea.vmem [#allocation2], %s773_s18 }
  0x1e   : > { %s296_s24 = scalar_lea.hbm %s1291_s0, %s791_s19  ;;  %s299_s22 = sshll.u32 %s291_s25, 4  ;;  %s300_s22 = int_to_ptr.vmem [resolvable:$true] %s299_s22 }
  0x1f   : > { %s297_s13 = sshll.u32 %s296_s24, 4  ;;  %p1182_p2 = pnand %p822_p3, %p41_p5  ;;  %s298_s13 = int_to_ptr.hbm [resolvable:$true] %s297_s13 }
  0x20   : > { %s288_s10 = scalar_lea.sflag [#allocation3], %s287_s17  ;;  %s944_s3 = sshra.s32 %s298_s13, 4  ;;  %s945_s3 = int_to_ptr.hbm [resolvable:$true] %s944_s3 }
  0x21   : > { %s946_s5 = scalar_lea.hbm %s945_s3, 32  ;;  %p948_p9 = pneg %p1182_p2 }
  0x22   : > { %p947_p7 = scmp.ne.s32.totalorder %s945_s3, %s946_s5  ;;  %s951_s20 = scalar_lea.hbm %s1291_s0, 96 }
  0x23   : > { %p952_p12 = scmp.lt.s32.totalorder %s945_s3, %s1291_s0  ;;  %p953_p13 = scmp.lt.s32.totalorder %s951_s20, %s946_s5 }
  0x24   : > { %p949_p10 = pnand %p948_p9, %p947_p7 }
  0x25   : > { %p954_p3 = por %p953_p13, %p952_p12 }
  0x26   : > { %p950_p11 = pneg %p949_p10 }
  0x28   : > { %p955_p5 = pnand %p954_p3, %p950_p11 }
  0x2a   : > { %958 = shalt.err (!%p955_p5)
}
  0x2b   : > { %s1311_s17 = smov 8   ;;  %s1312_s25 = smov 128  }
  0x2c   : > { %815 = dma.hbm_to_vmem [thread:$0]  (!%p1182_p2), %s298_s13, 512, %s300_s22, %s288_s10, %s1312_s25, %s1312_s25, %s1311_s17  }
  0x2d   : > { %318 = sbr.rel (%p1141_p8) target bundleno = 791 (0x317), region = 52  ;;  %s1202_s19 = sand.u32 (!%p1141_p8), 1, %s1036_s28  }
  0x2e   : > { %s777_s3 = sshll.u32 (!%p1141_p8), %s1202_s19, 5  ;;  %s321_s5 = scalar_lea.sflag (!%p1141_p8), [#allocation3], %s1202_s19 }
  0x2f   : > { %s1208_s18 = scalar_lea.vmem (!%p1141_p8), [#allocation2], %s777_s3 }
  0x32   : > { %1019 = dma.done.wait (%p1128_p4), %s321_s5, 512  }
  0x33   : > { %1021 = vsyncadd (%p1128_p4), %s321_s5, 4294966784 }
  0x34   : > { %1023 = dma.done.wait (%p46_p1), [#allocation6], 4096  }
  0x35   : > { %1025 = vsyncadd (%p46_p1), [#allocation6], 4294963200  ;;  %v451_v0 = vld [vmem:[#allocation7 + $0x78] sm:$0xff]  ;;  %v450_v1 = vld [vmem:[#allocation7 + $0x70] sm:$0xff]  ;;  %p373_p1 = scmp.lt.s32.totalorder %s1119_s9, 2  ;;  %v1050_v56 = vmov 0  }
  0x36   : > { %456 = vmatpush.msra.mxu1 %v451_v0  ;;  %v449_v2 = vld [vmem:[#allocation7 + $0x68] sm:$0xff]  ;;  %v448_v3 = vld [vmem:[#allocation7 + $0x60] sm:$0xff]  ;;  %v399_v4 = vld [vmem:[#allocation5 + $0x78] sm:$0xff]  ;;  %vm550_vm4 = vcmask 195584   ;;  %s371_s13 = scalar_lea.vmem [#allocation8], %s777_s3  ;;  %s792_s10 = sshll.u32 %s1119_s9, 5 }
  0x37   : > { %404 = vmatpush.msra.mxu0 %v399_v4  ;;  %v398_v5 = vld [vmem:[#allocation5 + $0x70] sm:$0xff]  ;;  %v447_v6 = vld [vmem:[#allocation7 + $0x58] sm:$0xff]  ;;  %v397_v7 = vld [vmem:[#allocation5 + $0x68] sm:$0xff]  ;;  %s374_s25 = scalar_select %p373_p1, %s1119_s9, 2 }
  0x38   : > { %457 = vmatpush.msra.mxu1 %v450_v1  ;;  %v446_v8 = vld [vmem:[#allocation7 + $0x50] sm:$0xff]  ;;  %v396_v9 = vld [vmem:[#allocation5 + $0x60] sm:$0xff]  ;;  %v445_v10 = vld [vmem:[#allocation7 + $0x48] sm:$0xff]  ;;  %s660_s24 = scalar_lea.hbm %s1299_s8, %s792_s10  ;;  %s661_s17 = sshll.u32 %s371_s13, 4  ;;  %s662_s17 = int_to_ptr.vmem [resolvable:$true] %s661_s17 }
  0x39   : > { %405 = vmatpush.msra.mxu0 %v398_v5  ;;  %v395_v11 = vld [vmem:[#allocation5 + $0x58] sm:$0xff]  ;;  %v435_v12 = vld [vmem:[%s1292_s1 + $0x10] sm:$0xff]  ;;  %v434_v13 = vld [vmem:[%s1292_s1 + $0x8] sm:$0xff]  ;;  %s781_s5 = sshll.u32 %s374_s25, 3  ;;  %s663_s25 = sshll.u32 %s660_s24, 4  ;;  %s664_s25 = int_to_ptr.hbm [resolvable:$true] %s663_s25 }
  0x3a   : > { %458 = vmatpush.msra.mxu1 %v449_v2  ;;  %628 = vmatpush.msra.mxu3 %v435_v12  ;;  %v444_v14 = vld [vmem:[#allocation7 + $0x40] sm:$0xff]  ;;  %v394_v15 = vld [vmem:[#allocation5 + $0x50] sm:$0xff]  ;;  %v443_v17 = vld [vmem:[#allocation7 + $0x38] sm:$0xff]  ;;  %s376_s16 = scalar_lea.vmem %s1298_s7, %s781_s5  ;;  %s649_s5 = scalar_lea.sflag [#allocation4], %s1202_s19 }
  0x3b   : > { %406 = vmatpush.msra.mxu0 %v397_v7  ;;  %v433_v16 = vld [vmem:[%s1292_s1] sm:$0xff]  ;;  %v393_v18 = vld [vmem:[#allocation5 + $0x48] sm:$0xff]  ;;  %v442_v19 = vld [vmem:[#allocation7 + $0x30] sm:$0xff] }
  0x3c   : > { %459 = vmatpush.msra.mxu1 %v448_v3  ;;  %629 = vmatpush.msra.mxu3 %v434_v13  ;;  %v392_v20 = vld [vmem:[#allocation5 + $0x40] sm:$0xff]  ;;  %v441_v21 = vld [vmem:[#allocation7 + $0x28] sm:$0xff]  ;;  %v391_v22 = vld [vmem:[#allocation5 + $0x38] sm:$0xff] }
  0x3d   : > { %407 = vmatpush.msra.mxu0 %v396_v9  ;;  %v440_v23 = vld [vmem:[#allocation7 + $0x20] sm:$0xff]  ;;  %v390_v24 = vld [vmem:[#allocation5 + $0x30] sm:$0xff]  ;;  %v439_v25 = vld [vmem:[#allocation7 + $0x18] sm:$0xff] }
  0x3e   : > { %460 = vmatpush.msra.mxu1 %v447_v6  ;;  %630 = vmatpush.msra.mxu3 %v433_v16  ;;  %v389_v26 = vld [vmem:[#allocation5 + $0x28] sm:$0xff]  ;;  %v438_v27 = vld [vmem:[#allocation7 + $0x10] sm:$0xff]  ;;  %v388_v28 = vld [vmem:[#allocation5 + $0x20] sm:$0xff] }
  0x3f   : > { %408 = vmatpush.msra.mxu0 %v395_v11  ;;  %v437_v29 = vld [vmem:[#allocation7 + $0x8] sm:$0xff]  ;;  %v387_v30 = vld [vmem:[#allocation5 + $0x18] sm:$0xff]  ;;  %v436_v31 = vld [vmem:[#allocation7] sm:$0xff] }
  0x40   : > { %461 = vmatpush.msra.mxu1 %v446_v8  ;;  %v386_v32 = vld [vmem:[#allocation5 + $0x10] sm:$0xff]  ;;  %v385_v33 = vld [vmem:[#allocation5 + $0x8] sm:$0xff]  ;;  %v384_v34 = vld [vmem:[#allocation5] sm:$0xff] }
  0x41   : > { %409 = vmatpush.msra.mxu0 %v394_v15  ;;  %v380_v35 = vld [vmem:[%s1208_s18] sm:$0xff]  ;;  %v381_v36 = vld [vmem:[%s1208_s18 + $0x8] sm:$0xff]  ;;  %v382_v37 = vld [vmem:[%s1208_s18 + $0x10] sm:$0xff] }
  0x42   : > { %462 = vmatpush.msra.mxu1 %v445_v10  ;;  %v383_v38 = vld [vmem:[%s1208_s18 + $0x18] sm:$0xff]  ;;  %v865_v41 = vld [vmem:[%s1297_s6] ss:$0 sm:$0xff]  ;;  %s988_s18 = sshra.s32 %s664_s25, 4  ;;  %s989_s18 = int_to_ptr.hbm [resolvable:$true] %s988_s18 }
  0x43   : > { %410 = vmatpush.msra.mxu0 %v393_v18  ;;  %v866_v46 = vld [vmem:[%s1295_s4] ss:$0 sm:$0xff]  ;;  %s990_s3 = scalar_lea.hbm %s989_s18, 32  ;;  %p995_p7 = scmp.lt.s32.totalorder %s989_s18, %s1299_s8 }
  0x44   : > { %463 = vmatpush.msra.mxu1 %v444_v14  ;;  %v515_v55 = vld [vmem:[%s376_s16] sm:$0xff]  ;;  %p991_p4 = scmp.ne.s32.totalorder %s989_s18, %s990_s3  ;;  %s994_s16 = scalar_lea.hbm %s1299_s8, 96 }
  0x45   : > { %411 = vmatpush.msra.mxu0 %v392_v20  ;;  %vm516_vm0 = vnez %v515_v55  ;;  %p996_p9 = scmp.lt.s32.totalorder %s994_s16, %s990_s3 }
  0x46   : > { %464 = vmatpush.msra.mxu1 %v443_v17  ;;  %v517_v57 = vsel %vm516_vm0, 16843009, %v1050_v56  ;;  %p992_p8 = pnand %p991_p4, %p1169_p0 }
  0x47   : > { %412 = vmatpush.msra.mxu0 %v391_v22  ;;  %v518_v58 = vunpack.c.0.s8 %v517_v57  ;;  %v519_v61 = vunpack.c.1.s8 %v517_v57  ;;  %v520_v1 = vunpack.c.2.s8 %v517_v57  ;;  %v521_v8 = vunpack.c.3.s8 %v517_v57  ;;  %p997_p10 = por %p996_p9, %p995_p7 }
  0x48   : > { %465 = vmatpush.msra.mxu1 %v442_v19  ;;  %p993_p2 = pneg %p992_p8 }
  0x49   : > { %413 = vmatpush.msra.mxu0 %v390_v24  ;;  %v522_v59 = vpack.c.b16 %v518_v58, %v518_v58  ;;  %v524_v62 = vpack.c.b16 %v519_v61, %v519_v61  ;;  %v526_v3 = vpack.c.b16 %v520_v1, %v520_v1 }
  0x4a   : > { %466 = vmatpush.msra.mxu1 %v441_v21  ;;  %p998_p11 = pnand %p997_p10, %p993_p2 }
  0x4b   : > { %414 = vmatpush.msra.mxu0 %v389_v26  ;;  %v523_v60 = vpack.c.b8 %v522_v59, %v522_v59  ;;  %v525_v0 = vpack.c.b8 %v524_v62, %v524_v62  ;;  %v527_v7 = vpack.c.b8 %v526_v3, %v526_v3 }
  0x4c   : > { %467 = vmatpush.msra.mxu1 %v440_v23 }
  0x4d   : > { %415 = vmatpush.msra.mxu0 %v388_v28  ;;  %vm530_vm1 = vnez %v523_v60  ;;  %vm531_vm2 = vnez %v525_v0  ;;  %vm532_vm5 = vnez %v527_v7 }
  0x4e   : > { %468 = vmatpush.msra.mxu1 %v439_v25  ;;  %v534_v63 = vsel %vm530_vm1, 16843009, %v1050_v56  ;;  %v535_v6 = vsel %vm531_vm2, 16843009, %v1050_v56  ;;  %v536_v15 = vsel %vm532_vm5, 16843009, %v1050_v56 }
  0x4f   : > { %416 = vmatpush.msra.mxu0 %v387_v30  ;;  %v538_v2 = vunpack.c.0.s8 %v534_v63  ;;  %v539_v11 = vunpack.c.0.s8 %v535_v6  ;;  %v540_v19 = vunpack.c.0.s8 %v536_v15 }
  0x50   : > { %469 = vmatpush.msra.mxu1 %v438_v27 }
  0x51   : > { %417 = vmatpush.msra.mxu0 %v386_v32  ;;  %vm542_vm3 = vcmp.ne.s32.totalorder %v538_v2, 0  ;;  %vm543_vm6 = vcmp.ne.s32.totalorder %v539_v11, 0  ;;  %vm544_vm8 = vcmp.ne.s32.totalorder %v540_v19, 0 }
  0x52   : > { %470 = vmatpush.msra.mxu1 %v437_v29 }
  0x53   : > { %418 = vmatpush.msra.mxu0 %v385_v33 }
  0x54   : > { %471 = vmatpush.msra.mxu1 %v436_v31 }
  0x55   : > { %472 = vmatmul.f32.vlgmr.msra.gmra.mxu1 %v433_v16  ;;  %419 = vmatpush.msra.mxu0 %v384_v34 }
  0x56   : > { %420 = vmatmul.f32.vlgmr.msra.gmra.mxu0 %v380_v35 }
  0x5d   : > { %475 = vmatmul.f32.gmra.mxu1 %v434_v13 }
  0x5e   : > { %423 = vmatmul.f32.gmra.mxu0 %v381_v36 }
  0x65   : > { %478 = vmatmul.f32.gmra.mxu1 %v435_v12  ;;  %v528_v12 = vpack.c.b16 %v521_v8, %v521_v8 }
  0x66   : > { %426 = vmatmul.f32.gmra.mxu0 %v382_v37 }
  0x67   : > { %v529_v16 = vpack.c.b8 %v528_v12, %v528_v12 }
  0x69   : > { %vm533_vm7 = vnez %v529_v16 }
  0x6a   : > { %v537_v22 = vsel %vm533_vm7, 16843009, %v1050_v56 }
  0x6b   : > { %v541_v25 = vunpack.c.0.s8 %v537_v22 }
  0x6d   : > { %vm545_vm9 = vcmp.ne.s32.totalorder %v541_v25, 0 }
  0x6e   : > { %429 = vmatmul.f32.gmra.mxu0 %v383_v38 }
  0xd2   : > { %v473_v39 = vpop.f32.mrf.mxu1 }
  0xd3   : > { %v421_v44 = vpop.f32.mrf.mxu0  ;;  %v474_v47 = vadd.f32 %v865_v41, %v473_v39 }
  0xd4   : > { %v422_v48 = vadd.f32 %v866_v46, %v421_v44 }
  0xda   : > { %v476_v40 = vpop.f32.mrf.mxu1 }
  0xdb   : > { %v477_v45 = vadd.f32 %v865_v41, %v476_v40  ;;  %v424_v49 = vpop.f32.mrf.mxu0 }
  0xdc   : > { %v425_v50 = vadd.f32 %v866_v46, %v424_v49 }
  0xe2   : > { %v479_v42 = vpop.f32.mrf.mxu1 }
  0xe3   : > { %v480_v43 = vadd.f32 %v865_v41, %v479_v42  ;;  %v427_v51 = vpop.f32.mrf.mxu0 }
  0xe4   : > { %v428_v52 = vadd.f32 %v866_v46, %v427_v51  ;;  %v867_v51 = vld [vmem:[%s1293_s2] ss:$0 sm:$0xff] }
  0xe5   : > { %495 = vmatpush.xpose.msra.mxu2 %v480_v43 }
  0xe9   : > { %496 = vmatpush.xpose.msra.mxu2 %v477_v45 }
  0xeb   : > { %v430_v53 = vpop.f32.mrf.mxu0 }
  0xec   : > { %v431_v54 = vadd.f32 %v866_v46, %v430_v53 }
  0xed   : > { %497 = vmatpush.xpose.msra.mxu2 %v474_v47 }
  0xf0   : > { %498 = vmatmul.f32.vlgmr.msra.gmra.mxu2 %v422_v48 }
  0xf8   : > { %501 = vmatmul.f32.gmra.mxu2 %v425_v50 }
 0x100   : > { %504 = vmatmul.f32.gmra.mxu2 %v428_v52 }
 0x108   : > { %507 = vmatmul.f32.gmra.mxu2 %v431_v54 }
 0x173   : > { %v499_v4 = vpop.f32.mrf.mxu2 }
 0x174   : > { %v511_v5 = vmul.f32 0.17677669, %v499_v4 }
 0x176   : > { %v546_v9 = vsel %vm542_vm3, -4.2949673e+09, %v511_v5 }
 0x177   : > { %v551_v10 = vsel %vm550_vm4, %v546_v9, -inf }
 0x178   : > { %552 = vmax.xlane.f32.xlu0 %v551_v10 }
 0x17b   : > { %v502_v13 = vpop.f32.mrf.mxu2 }
 0x17c   : > { %v512_v14 = vmul.f32 0.17677669, %v502_v13 }
 0x17e   : > { %v547_v17 = vsel %vm543_vm6, -4.2949673e+09, %v512_v14 }
 0x17f   : > { %v554_v18 = vsel %vm550_vm4, %v547_v17, -inf }
 0x180   : > { %555 = vmax.xlane.f32.xlu0 %v554_v18 }
 0x183   : > { %v505_v20 = vpop.f32.mrf.mxu2 }
 0x184   : > { %v513_v21 = vmul.f32 0.17677669, %v505_v20 }
 0x186   : > { %v548_v23 = vsel %vm544_vm8, -4.2949673e+09, %v513_v21 }
 0x187   : > { %v557_v24 = vsel %vm550_vm4, %v548_v23, -inf }
 0x188   : > { %558 = vmax.xlane.f32.xlu1 %v557_v24 }
 0x18b   : > { %v508_v26 = vpop.f32.mrf.mxu2 }
 0x18c   : > { %v514_v27 = vmul.f32 0.17677669, %v508_v26 }
 0x18e   : > { %v549_v28 = vsel %vm545_vm9, -4.2949673e+09, %v514_v27 }
 0x18f   : > { %v560_v29 = vsel %vm550_vm4, %v549_v28, -inf }
 0x190   : > { %561 = vmax.xlane.f32.xlu1 %v560_v29 }
 0x1eb   : > { %v553_v30 = vpop.xlane.xlu0 %552 }
 0x1ec   : > { %v563_v31 = vsub.f32 %v546_v9, %v553_v30 }
 0x1ee   : > { %v567_v32 = vmul.f32 1.442695, %v563_v31 }
 0x1f0   : > { %868 = vpow2.f32 %v567_v32 }
 0x1f3   : > { %v556_v33 = vpop.xlane.xlu0 %555 }
 0x1f4   : > { %v564_v34 = vsub.f32 %v547_v17, %v556_v33 }
 0x1f6   : > { %v869_v35 = vpop.eup %868  ;;  %v569_v36 = vmul.f32 1.442695, %v564_v34 }
 0x1f7   : > { %v575_v37 = vsel %vm550_vm4, %v869_v35, 0.0 }
 0x1f8   : > { %870 = vpow2.f32 %v569_v36  ;;  %576 = vadd.xlane.f32.xlu2 %v575_v37 }
 0x1fb   : > { %v559_v38 = vpop.xlane.xlu1 %558 }
 0x1fc   : > { %v565_v39 = vsub.f32 %v548_v23, %v559_v38 }
 0x1fe   : > { %v871_v40 = vpop.eup %870  ;;  %v571_v41 = vmul.f32 1.442695, %v565_v39 }
 0x1ff   : > { %v578_v42 = vsel %vm550_vm4, %v871_v40, 0.0 }
 0x200   : > { %872 = vpow2.f32 %v571_v41  ;;  %579 = vadd.xlane.f32.xlu2 %v578_v42 }
 0x203   : > { %v562_v43 = vpop.xlane.xlu1 %561 }
 0x204   : > { %v566_v44 = vsub.f32 %v549_v28, %v562_v43 }
 0x206   : > { %v873_v45 = vpop.eup %872  ;;  %v573_v46 = vmul.f32 1.442695, %v566_v44 }
 0x207   : > { %v581_v47 = vsel %vm550_vm4, %v873_v45, 0.0 }
 0x208   : > { %874 = vpow2.f32 %v573_v46  ;;  %582 = vadd.xlane.f32.xlu0 %v581_v47 }
 0x20e   : > { %v875_v48 = vpop.eup %874 }
 0x20f   : > { %v584_v49 = vsel %vm550_vm4, %v875_v48, 0.0 }
 0x210   : > { %585 = vadd.xlane.f32.xlu1 %v584_v49 }
 0x26b   : > { %v577_v50 = vpop.xlane.xlu2 %576 }
 0x26c   : > { %876 = vrcp.f32 %v577_v50 }
 0x272   : > { %v877_v52 = vpop.eup %876 }
 0x273   : > { %v580_v53 = vpop.xlane.xlu2 %579  ;;  %v591_v54 = vmul.f32 %v877_v52, %v869_v35 }
 0x274   : > { %878 = vrcp.f32 %v580_v53 }
 0x275   : > { %v599_v55 = vmul.f32 %v867_v51, %v591_v54 }
 0x277   : > { %782 = vmatmul.msk.f32.vlgmr.msra.gmra.mxu3 %vm550_vm4, %v599_v55 }
 0x27a   : > { %v879_v56 = vpop.eup %878 }
 0x27b   : > { %v583_v57 = vpop.xlane.xlu0 %582  ;;  %v592_v58 = vmul.f32 %v879_v56, %v871_v40 }
 0x27c   : > { %880 = vrcp.f32 %v583_v57 }
 0x27d   : > { %v600_v59 = vmul.f32 %v867_v51, %v592_v58 }
 0x27f   : > { %783 = vmatmul.msk.f32.gmra.mxu3 %vm550_vm4, %v600_v59 }
 0x282   : > { %v881_v60 = vpop.eup %880 }
 0x283   : > { %v586_v61 = vpop.xlane.xlu1 %585  ;;  %v593_v62 = vmul.f32 %v881_v60, %v873_v45 }
 0x284   : > { %882 = vrcp.f32 %v586_v61 }
 0x285   : > { %v601_v63 = vmul.f32 %v867_v51, %v593_v62 }
 0x287   : > { %784 = vmatmul.msk.f32.gmra.mxu3 %vm550_vm4, %v601_v63 }
 0x28a   : > { %v883_v0 = vpop.eup %882 }
 0x28b   : > { %v594_v1 = vmul.f32 %v883_v0, %v875_v48 }
 0x28d   : > { %v602_v2 = vmul.f32 %v867_v51, %v594_v1 }
 0x28f   : > { %785 = vmatmul.msk.f32.gmra.mxu3 %vm550_vm4, %v602_v2 }
 0x2fa   : > { %v632_v3 = vpop.f32.mrf.mxu3 }
 0x2fb   : > { %644 = vst [vmem:[%s371_s13] sm:$0xff] %v632_v3 }
 0x302   : > { %v635_v4 = vpop.f32.mrf.mxu3 }
 0x303   : > { %645 = vst [vmem:[%s371_s13 + $0x8] sm:$0xff] %v635_v4 }
 0x30a   : > { %v638_v5 = vpop.f32.mrf.mxu3 }
 0x30b   : > { %646 = vst [vmem:[%s371_s13 + $0x10] sm:$0xff] %v638_v5 }
 0x312   : > { %v641_v6 = vpop.f32.mrf.mxu3 }
 0x313   : > { %647 = vst [vmem:[%s371_s13 + $0x18] sm:$0xff] %v641_v6 }
 0x314   : > { %1001 = shalt.err (!%p998_p11)
}
 0x315   : > { %s1051_s19 = smov 128   ;;  %s1052_s13 = smov 8  }
 0x316   : > { %803 = dma.vmem_to_hbm [thread:$0]  (%p1169_p0), %s662_s17, 512, %s664_s25, %s649_s5, %s1051_s19, %s1051_s19, %s1052_s13  }
 0x317 PF: > { %p825_p12 = scmp.ge.s32.totalorder %s1044_s30, 2  ;;  %s678_s10 = sand.u32 1, %s1032_s27  }
 0x318   : > { %s679_s20 = scalar_lea.sflag [#allocation4], %s678_s10 }
 0x319   : > { %p817_p13 = pnand %p825_p12, %p1133_p6 }
 0x31b   : > { %p818_p3 = pneg %p817_p13 }
 0x31d   : > { %1027 = dma.done.wait (%p818_p3), %s679_s20, 512  }
 0x31e   : > { %1029 = vsyncadd (%p818_p3), %s679_s20, 4294966784  ;;  %p22_p5 = scmp.ge.s32.totalorder %s1159_s26, 5   ;;  %s1313_s27 = smov %s1036_s28 }
 0x31f   : > { %s1314_s28 = smov %s1040_s29  ;;  %s1315_s29 = smov %s1175_s15 }
 0x320   : > { %s1316_s30 = smov %s1159_s26  ;;  %24 = sbr.rel (!%p22_p5) target bundleno = 9 (0x9), region = 108 }
 0x325   :  { %685 = vsyncpa [#allocation3], 1 }
 0x326   :  { %687 = vsyncpa [#allocation3 + $0x1], 1 }
 0x327   :  { %688 = vsyncpa [#allocation6], 1 }
 0x328   :  { %689 = vsyncpa [#allocation4], 1 }
 0x329   :  { %691 = vsyncpa [#allocation4 + $0x1], 1 }

</bundles_post_ra>
